<compile_context>
chip_gen: v7x
topology: tpu7x:2x2x1
jax: 0.10.0
libtpu: 0.0.40
codegen_flags: <defaults>
</compile_context>

<pallas_src>
import jax
import jax.numpy as jnp
from jax.experimental import pallas as pl
from jax.experimental.pallas import tpu as pltpu


def _round_up(x, m):
    return -(-x // m) * m


def _aggregator_kernel(x_ref, scale_ref, src_ref,
                       wt_ref, bt_ref,
                       w1p_ref, w1s_ref, b1_ref,
                       w2_ref, b2_ref,
                       out_ref):
    tb, n = scale_ref.shape                # batch tile, (padded) neighbors
    d = wt_ref.shape[1]                    # n_node_features

    # transform: one flat (TB*N, F_total) @ (F_total, D) MXU pass; the torch
    # cat([neighbors, edge, time], dim=2) is done once in the producer.
    h = jnp.dot(x_ref[...], wt_ref[...], preferred_element_type=jnp.float32)
    h = h + bt_ref[...]                    # (1, D) broadcast

    # edge-weight * padding-mask, pre-fused into one lane-dense (TB, N) block,
    # applied after a sublane-aligned (N % 8 == 0) reshape -> no relayout copy.
    h = h.reshape(tb, n, d) * scale_ref[...][:, :, None]

    # ReLU; dropout is identity in eval mode.
    # TODO(synk): training-mode dropout (stochastic masking) not implemented.
    h = jnp.maximum(h, 0.0)

    # max-pool over the neighbor (sublane) axis — rides the XLU.
    pooled = jnp.max(h, axis=1)            # (TB, D) f32

    # MergeLayer: fc1(cat([pooled, src])) == pooled @ W1p + src @ W1s + b1
    z = (jnp.dot(pooled.astype(w1p_ref.dtype), w1p_ref[...],
                 preferred_element_type=jnp.float32)
         + jnp.dot(src_ref[...], w1s_ref[...],
                   preferred_element_type=jnp.float32)
         + b1_ref[...])
    z = jnp.maximum(z, 0.0)

    out = (jnp.dot(z.astype(w2_ref.dtype), w2_ref[...],
                   preferred_element_type=jnp.float32)
           + b2_ref[...])
    out_ref[...] = out.astype(out_ref.dtype)


def _choose_tile(B, tile_bytes_fn, budget):
    """Pick a batch tile. Prefer tiles that divide B exactly (no wrapper-side
    pad of the big stream) and that leave >= 2 grid steps (so v7x's two
    TensorCores both get work) without shrinking the tile more than ~4x."""
    cands = sorted({d for d in range(8, B + 1, 8) if B % d == 0} | {B})
    fitting = [c for c in cands if tile_bytes_fn(c) <= budget]
    if fitting:
        best = max(fitting)
        multi = [c for c in fitting if B // c >= 2]
        if B // best < 2 and multi and max(multi) * 4 >= best:
            best = max(multi)
        return best, B
    # No exact-divisor tile fits the budget: fall back to an aligned tile and
    # pad the batch up to a multiple of it (rare path).
    tb = 8
    while tb * 2 < B and tile_bytes_fn(tb * 2) <= budget:
        tb *= 2
    return tb, _round_up(B, tb)


def max_pooling_aggregator(src_node_features,
                           neighbors_features,
                           neighbors_time_features,
                           edge_features,
                           neighbors_padding_mask,
                           weights,
                           params,
                           *,
                           compute_dtype=jnp.bfloat16,
                           block_b=None):
    """Pallas-backed forward of MaxPoolingAggregator (eval mode)."""
    B, N, _ = neighbors_features.shape
    F = (neighbors_features.shape[2] + edge_features.shape[2]
         + neighbors_time_features.shape[2])
    D = params['wt'].shape[1]
    out_dim = params['w2'].shape[1]
    out_cols = _round_up(out_dim, 128)          # lane-dense final store
    itemsize = jnp.dtype(compute_dtype).itemsize

    # ---- single fused producer pass: cast + concat (+ neighbor sublane pad) --
    # torch order: cat([neighbors, edge, time], dim=2)
    x = jnp.concatenate(
        [neighbors_features, edge_features, neighbors_time_features],
        axis=2).astype(compute_dtype)                         # (B, N, F)
    Np = _round_up(max(N, 8), 8)                              # sublane-align N
    if Np != N:
        x = jnp.pad(x, ((0, 0), (0, Np - N), (0, 0)))         # padded rows get scale 0

    # fused edge-weight * padding-mask scale, lane-dense (B, N) layout (tiny)
    scale = (weights.astype(jnp.float32)
             * jnp.logical_not(neighbors_padding_mask).astype(jnp.float32))
    if Np != N:
        scale = jnp.pad(scale, ((0, 0), (0, Np - N)))

    src = src_node_features.astype(compute_dtype)

    # ---- parameters (resident in VMEM via constant index maps) --------------
    wt = params['wt'].astype(compute_dtype)                   # (F, D)
    w1p = params['w1p'].astype(compute_dtype)                 # (D, D)
    w1s = params['w1s'].astype(compute_dtype)                 # (D, D)
    w2 = params['w2'].astype(compute_dtype)                   # (D, out_dim)
    bt = params['bt'].astype(jnp.float32)                     # (1, D)
    b1 = params['b1'].astype(jnp.float32)                     # (1, D)
    b2 = params['b2'].astype(jnp.float32)                     # (1, out_dim)
    if out_cols != out_dim:                                   # lane-dense fc2 / store
        w2 = jnp.pad(w2, ((0, 0), (0, out_cols - out_dim)))
        b2 = jnp.pad(b2, ((0, 0), (0, out_cols - out_dim)))

    # ---- generation-aware VMEM budget & batch tile ---------------------------
    try:
        vmem_cap = int(pltpu.get_tpu_info().vmem_capacity_bytes)
    except Exception:                                         # info unavailable
        vmem_cap = 64 * 1024 * 1024                           # assume smallest (v7x)
    vmem_limit = min(max(vmem_cap - (16 << 20), 32 << 20), 64 << 20)
    budget = (vmem_limit * 3) // 4                            # compiler headroom

    def _padded_bytes(rows, cols, isz):
        sub = 8 * max(1, 4 // isz)                            # sublane tiling
        return _round_up(rows, sub) * _round_up(cols, 128) * isz

    param_bytes = sum(_padded_bytes(p.shape[0], p.shape[1], p.dtype.itemsize)
                      for p in (wt, bt, w1p, w1s, b1, w2, b2))

    def tile_bytes(tb):
        # Streams double-buffered; params counted twice (worst case if single
        # buffering is unavailable); f32 intermediates h / relu(h*scale),
        # pooled and z included; 1.25x fudge for compiler temporaries.
        stream = (_padded_bytes(tb * Np, F, itemsize)         # features
                  + _padded_bytes(tb, Np, 4)                  # scale
                  + _padded_bytes(tb, D, itemsize)            # src
                  + _padded_bytes(tb, out_cols, 4))           # output
        inter = (2 * _padded_bytes(tb * Np, D, 4)
                 + 2 * _padded_bytes(tb, D, 4))
        return int((2 * stream + 2 * param_bytes + inter) * 1.25)

    if block_b is not None:
        tb = block_b
        bp = _round_up(B, tb)
    else:
        tb, bp = _choose_tile(B, tile_bytes, budget)

    # pad the batch only if the chosen tile does not divide it (rare path)
    if bp != B:
        pad = bp - B
        x = jnp.pad(x, ((0, pad), (0, 0), (0, 0)))
        scale = jnp.pad(scale, ((0, pad), (0, 0)))
        src = jnp.pad(src, ((0, pad), (0, 0)))
    x = x.reshape(bp * Np, F)                                  # fold neighbors into rows

    grid = (bp // tb,)

    def stream_spec(rows, cols):
        return pl.BlockSpec((rows, cols), lambda i: (i, 0))

    def param_spec(shape, mode):
        imap = lambda i: tuple(0 for _ in shape)
        if mode is None:
            return pl.BlockSpec(shape, imap)
        return pl.BlockSpec(shape, imap, pipeline_mode=mode)

    def run(param_mode):
        return pl.pallas_call(
            _aggregator_kernel,
            out_shape=jax.ShapeDtypeStruct((bp, out_cols), jnp.float32),
            grid=grid,
            in_specs=[
                stream_spec(tb * Np, F),      # fused feature stream (flat rows)
                stream_spec(tb, Np),          # weight * (~mask) scale
                stream_spec(tb, D),           # src node features
                param_spec(wt.shape, param_mode),
                param_spec(bt.shape, param_mode),
                param_spec(w1p.shape, param_mode),
                param_spec(w1s.shape, param_mode),
                param_spec(b1.shape, param_mode),
                param_spec(w2.shape, param_mode),
                param_spec(b2.shape, param_mode),
            ],
            out_specs=stream_spec(tb, out_cols),
            compiler_params=pltpu.CompilerParams(
                dimension_semantics=("parallel",),   # megacore / v7x 2-TC split
                vmem_limit_bytes=int(vmem_limit),
            ),
        )(x, scale, src, wt, bt, w1p, w1s, b1, w2, b2)

    # Constant-index parameter blocks do not need double buffering; fall back
    # to default buffering if this JAX version rejects pipeline_mode.
    try:
        out = jax.block_until_ready(run(pl.Buffered(1)))
    except Exception:
        out = run(None)

    return out[:B, :out_dim]


def _reference(src, neigh, time_feat, edge_feat, mask, weights, params):
    """Pure-JAX reference matching the torch module's op order."""
    x = jnp.concatenate([neigh, edge_feat, time_feat], axis=2)
    h = jnp.einsum('bnf,fd->bnd', x, params['wt']) + params['bt'][0]
    h = h * weights[:, :, None]
    h = h * jnp.logical_not(mask).astype(jnp.float32)[:, :, None]
    h = jax.nn.relu(h)
    pooled = jnp.max(h, axis=1)
    z = jax.nn.relu(pooled @ params['w1p'] + src @ params['w1s'] + params['b1'][0])
    return z @ params['w2'] + params['b2'][0]


def init_params(key, n_node, n_neigh, n_edge, time_dim, out_dim):
    """Deterministic parameter init (PyTorch-Linear-like uniform), stored
    transposed so matmuls are x @ W with feature-last layout. Biases (1, dim)."""
    f_in = n_neigh + time_dim + n_edge
    ks = jax.random.split(key, 6)

    def lin(kw, kb, fan_in, fan_out):
        bound = 1.0 / jnp.sqrt(fan_in)
        w = jax.random.uniform(kw, (fan_in, fan_out), jnp.float32, -bound, bound)
        b = jax.random.uniform(kb, (1, fan_out), jnp.float32, -bound, bound)
        return w, b

    wt, bt = lin(ks[0], ks[1], f_in, n_node)             # transform
    w1, b1 = lin(ks[2], ks[3], 2 * n_node, n_node)       # merger.fc1
    w2, b2 = lin(ks[4], ks[5], n_node, out_dim)          # merger.fc2
    return {
        'wt': wt, 'bt': bt,
        'w1p': w1[:n_node], 'w1s': w1[n_node:], 'b1': b1,
        'w2': w2, 'b2': b2,
    }


if __name__ == "__main__":
    # small shapes consistent with the module
    B, N = 4, 8                 # batch, num neighbors
    n_node = 32                 # n_node_features (== src feature dim)
    n_neigh_feat = 16           # n_neighbors_features (raw)
    n_edge = 8                  # n_edge_features
    time_dim = 8
    out_dim = 32                # output_dimension

    key = jax.random.PRNGKey(0)
    kp, k1, k2, k3, k4, k5, k6 = jax.random.split(key, 7)

    params = init_params(kp, n_node, n_neigh_feat, n_edge, time_dim, out_dim)

    src = jax.random.normal(k1, (B, n_node), jnp.float32)
    neigh = jax.random.normal(k2, (B, N, n_neigh_feat), jnp.float32)
    time_f = jax.random.normal(k3, (B, N, time_dim), jnp.float32)
    edge_f = jax.random.normal(k4, (B, N, n_edge), jnp.float32)
    pad_mask = jax.random.bernoulli(k5, 0.25, (B, N))          # bool padding mask
    wts = jax.random.uniform(k6, (B, N), jnp.float32)

    ref = _reference(src, neigh, time_f, edge_f, pad_mask, wts, params)

    # f32 path (strict numerical check)
    out_f32 = max_pooling_aggregator(src, neigh, time_f, edge_f, pad_mask, wts,
                                     params, compute_dtype=jnp.float32)
    out_f32 = jax.block_until_ready(out_f32)
    assert out_f32.shape == (B, out_dim)
    assert jnp.allclose(out_f32, ref, atol=1e-4, rtol=1e-4), "f32 mismatch vs reference"

    # default bf16-stream path (HBM-bound kernel -> halved stream bytes);
    # f32 accumulate + f32 elementwise, so also safe on v5e. Loose tolerance.
    out_bf16 = jax.block_until_ready(
        max_pooling_aggregator(src, neigh, time_f, edge_f, pad_mask, wts, params))
    max_err = float(jnp.max(jnp.abs(out_bf16 - ref)))
    assert max_err < 0.15, f"bf16 path diverged from reference (max err {max_err})"

    print("KERNEL_OK")
</pallas_src>

<mosaic_0001>
module attributes {stable_mosaic.version = 11 : i64} {
  func.func @_aggregator_kernel(%arg0: i32, %arg1: memref<32x32xf32, #tpu.memory_space<vmem>>, %arg2: memref<4x8xf32, #tpu.memory_space<vmem>>, %arg3: memref<4x32xf32, #tpu.memory_space<vmem>>, %arg4: memref<32x32xf32, #tpu.memory_space<vmem>>, %arg5: memref<1x32xf32, #tpu.memory_space<vmem>>, %arg6: memref<32x32xf32, #tpu.memory_space<vmem>>, %arg7: memref<32x32xf32, #tpu.memory_space<vmem>>, %arg8: memref<1x32xf32, #tpu.memory_space<vmem>>, %arg9: memref<32x128xf32, #tpu.memory_space<vmem>>, %arg10: memref<1x128xf32, #tpu.memory_space<vmem>>, %arg11: memref<4x128xf32, #tpu.memory_space<vmem>>) attributes {dimension_semantics = [#tpu.dimension_semantics<parallel>], iteration_bounds = array<i64: 1>, scalar_prefetch = 0 : i64, scratch_operands = 0 : i64, tpu.core_type = #tpu.core_type<tc>, window_params = [{transform_indices = @transform_0, window_bounds = array<i64: 32, 32>}, {transform_indices = @transform_1, window_bounds = array<i64: 4, 8>}, {transform_indices = @transform_2, window_bounds = array<i64: 4, 32>}, {pipeline_mode = #tpu.pipeline_mode<synchronous>, transform_indices = @transform_3, window_bounds = array<i64: 32, 32>}, {pipeline_mode = #tpu.pipeline_mode<synchronous>, transform_indices = @transform_4, window_bounds = array<i64: 1, 32>}, {pipeline_mode = #tpu.pipeline_mode<synchronous>, transform_indices = @transform_5, window_bounds = array<i64: 32, 32>}, {pipeline_mode = #tpu.pipeline_mode<synchronous>, transform_indices = @transform_6, window_bounds = array<i64: 32, 32>}, {pipeline_mode = #tpu.pipeline_mode<synchronous>, transform_indices = @transform_7, window_bounds = array<i64: 1, 32>}, {pipeline_mode = #tpu.pipeline_mode<synchronous>, transform_indices = @transform_8, window_bounds = array<i64: 32, 128>}, {pipeline_mode = #tpu.pipeline_mode<synchronous>, transform_indices = @transform_9, window_bounds = array<i64: 1, 128>}, {transform_indices = @transform_10, window_bounds = array<i64: 4, 128>}]} {
    %c0 = arith.constant 0 : index
    %c0_0 = arith.constant 0 : index
    %0 = vector.load %arg1[%c0, %c0_0] : memref<32x32xf32, #tpu.memory_space<vmem>>, vector<32x32xf32>
    %c0_1 = arith.constant 0 : index
    %c0_2 = arith.constant 0 : index
    %1 = vector.load %arg4[%c0_1, %c0_2] : memref<32x32xf32, #tpu.memory_space<vmem>>, vector<32x32xf32>
    %cst = arith.constant dense<0.000000e+00> : vector<32x32xf32>
    %2 = tpu.matmul %0, %1, %cst {dimension_numbers = #tpu.dot_dimension_numbers<[1], [0], [0], [1], [0, 0, 1, 1], [], []>} : vector<32x32xf32>, vector<32x32xf32>, vector<32x32xf32> -> vector<32x32xf32>
    %c0_3 = arith.constant 0 : index
    %c0_4 = arith.constant 0 : index
    %3 = vector.load %arg5[%c0_3, %c0_4] : memref<1x32xf32, #tpu.memory_space<vmem>>, vector<1x32xf32>
    %4 = vector.broadcast %3 : vector<1x32xf32> to vector<32x32xf32>
    %5 = arith.addf %2, %4 : vector<32x32xf32>
    %6 = vector.shape_cast %5 : vector<32x32xf32> to vector<4x8x32xf32>
    %c0_5 = arith.constant 0 : index
    %c0_6 = arith.constant 0 : index
    %7 = vector.load %arg2[%c0_5, %c0_6] : memref<4x8xf32, #tpu.memory_space<vmem>>, vector<4x8xf32>
    %8 = vector.shape_cast %7 : vector<4x8xf32> to vector<4x8x1xf32>
    %9 = vector.broadcast %8 : vector<4x8x1xf32> to vector<4x8x32xf32>
    %10 = arith.mulf %6, %9 : vector<4x8x32xf32>
    %cst_7 = arith.constant 0.000000e+00 : f32
    %11 = vector.broadcast %cst_7 : f32 to vector<4x8x32xf32>
    %12 = arith.maximumf %10, %11 : vector<4x8x32xf32>
    %cst_8 = arith.constant dense<0xFF800000> : vector<4x32xf32>
    %13 = vector.multi_reduction <maximumf>, %12, %cst_8 [1] : vector<4x8x32xf32> to vector<4x32xf32>
    %c0_9 = arith.constant 0 : index
    %c0_10 = arith.constant 0 : index
    %14 = vector.load %arg6[%c0_9, %c0_10] : memref<32x32xf32, #tpu.memory_space<vmem>>, vector<32x32xf32>
    %cst_11 = arith.constant dense<0.000000e+00> : vector<4x32xf32>
    %15 = tpu.matmul %13, %14, %cst_11 {dimension_numbers = #tpu.dot_dimension_numbers<[1], [0], [0], [1], [0, 0, 1, 1], [], []>} : vector<4x32xf32>, vector<32x32xf32>, vector<4x32xf32> -> vector<4x32xf32>
    %c0_12 = arith.constant 0 : index
    %c0_13 = arith.constant 0 : index
    %16 = vector.load %arg3[%c0_12, %c0_13] : memref<4x32xf32, #tpu.memory_space<vmem>>, vector<4x32xf32>
    %c0_14 = arith.constant 0 : index
    %c0_15 = arith.constant 0 : index
    %17 = vector.load %arg7[%c0_14, %c0_15] : memref<32x32xf32, #tpu.memory_space<vmem>>, vector<32x32xf32>
    %cst_16 = arith.constant dense<0.000000e+00> : vector<4x32xf32>
    %18 = tpu.matmul %16, %17, %cst_16 {dimension_numbers = #tpu.dot_dimension_numbers<[1], [0], [0], [1], [0, 0, 1, 1], [], []>} : vector<4x32xf32>, vector<32x32xf32>, vector<4x32xf32> -> vector<4x32xf32>
    %19 = arith.addf %15, %18 : vector<4x32xf32>
    %c0_17 = arith.constant 0 : index
    %c0_18 = arith.constant 0 : index
    %20 = vector.load %arg8[%c0_17, %c0_18] : memref<1x32xf32, #tpu.memory_space<vmem>>, vector<1x32xf32>
    %21 = vector.broadcast %20 : vector<1x32xf32> to vector<4x32xf32>
    %22 = arith.addf %19, %21 : vector<4x32xf32>
    %cst_19 = arith.constant 0.000000e+00 : f32
    %23 = vector.broadcast %cst_19 : f32 to vector<4x32xf32>
    %24 = arith.maximumf %22, %23 : vector<4x32xf32>
    %c0_20 = arith.constant 0 : index
    %c0_21 = arith.constant 0 : index
    %25 = vector.load %arg9[%c0_20, %c0_21] : memref<32x128xf32, #tpu.memory_space<vmem>>, vector<32x128xf32>
    %cst_22 = arith.constant dense<0.000000e+00> : vector<4x128xf32>
    %26 = tpu.matmul %24, %25, %cst_22 {dimension_numbers = #tpu.dot_dimension_numbers<[1], [0], [0], [1], [0, 0, 1, 1], [], []>} : vector<4x32xf32>, vector<32x128xf32>, vector<4x128xf32> -> vector<4x128xf32>
    %c0_23 = arith.constant 0 : index
    %c0_24 = arith.constant 0 : index
    %27 = vector.load %arg10[%c0_23, %c0_24] : memref<1x128xf32, #tpu.memory_space<vmem>>, vector<1x128xf32>
    %28 = vector.broadcast %27 : vector<1x128xf32> to vector<4x128xf32>
    %29 = arith.addf %26, %28 : vector<4x128xf32>
    %c0_25 = arith.constant 0 : index
    %c0_26 = arith.constant 0 : index
    %30 = vector.load %arg11[%c0_25, %c0_26] : memref<4x128xf32, #tpu.memory_space<vmem>>, vector<4x128xf32>
    tpu.vector_store %arg11[%c0_25, %c0_26], %29 {strides = array<i32>} : memref<4x128xf32, #tpu.memory_space<vmem>>, vector<4x128xf32>,
    return
  }
  func.func @transform_0(%arg0: i32) -> (i32, i32) {
    %c0_i32 = arith.constant 0 : i32
    %c0_i32_0 = arith.constant 0 : i32
    return %arg0, %c0_i32 : i32, i32
  }
  func.func @transform_1(%arg0: i32) -> (i32, i32) {
    %c0_i32 = arith.constant 0 : i32
    %c0_i32_0 = arith.constant 0 : i32
    return %arg0, %c0_i32 : i32, i32
  }
  func.func @transform_2(%arg0: i32) -> (i32, i32) {
    %c0_i32 = arith.constant 0 : i32
    %c0_i32_0 = arith.constant 0 : i32
    return %arg0, %c0_i32 : i32, i32
  }
  func.func @transform_3(%arg0: i32) -> (i32, i32) {
    %c0_i32 = arith.constant 0 : i32
    %c0_i32_0 = arith.constant 0 : i32
    %c0_i32_1 = arith.constant 0 : i32
    return %c0_i32, %c0_i32_0 : i32, i32
  }
  func.func @transform_4(%arg0: i32) -> (i32, i32) {
    %c0_i32 = arith.constant 0 : i32
    %c0_i32_0 = arith.constant 0 : i32
    %c0_i32_1 = arith.constant 0 : i32
    return %c0_i32, %c0_i32_0 : i32, i32
  }
  func.func @transform_5(%arg0: i32) -> (i32, i32) {
    %c0_i32 = arith.constant 0 : i32
    %c0_i32_0 = arith.constant 0 : i32
    %c0_i32_1 = arith.constant 0 : i32
    return %c0_i32, %c0_i32_0 : i32, i32
  }
  func.func @transform_6(%arg0: i32) -> (i32, i32) {
    %c0_i32 = arith.constant 0 : i32
    %c0_i32_0 = arith.constant 0 : i32
    %c0_i32_1 = arith.constant 0 : i32
    return %c0_i32, %c0_i32_0 : i32, i32
  }
  func.func @transform_7(%arg0: i32) -> (i32, i32) {
    %c0_i32 = arith.constant 0 : i32
    %c0_i32_0 = arith.constant 0 : i32
    %c0_i32_1 = arith.constant 0 : i32
    return %c0_i32, %c0_i32_0 : i32, i32
  }
  func.func @transform_8(%arg0: i32) -> (i32, i32) {
    %c0_i32 = arith.constant 0 : i32
    %c0_i32_0 = arith.constant 0 : i32
    %c0_i32_1 = arith.constant 0 : i32
    return %c0_i32, %c0_i32_0 : i32, i32
  }
  func.func @transform_9(%arg0: i32) -> (i32, i32) {
    %c0_i32 = arith.constant 0 : i32
    %c0_i32_0 = arith.constant 0 : i32
    %c0_i32_1 = arith.constant 0 : i32
    return %c0_i32, %c0_i32_0 : i32, i32
  }
  func.func @transform_10(%arg0: i32) -> (i32, i32) {
    %c0_i32 = arith.constant 0 : i32
    %c0_i32_0 = arith.constant 0 : i32
    return %arg0, %c0_i32 : i32, i32
  }
}

module attributes {stable_mosaic.version = 11 : i64} {
  func.func @_aggregator_kernel(%arg0: i32, %arg1: memref<32x32xf32, #tpu.memory_space<vmem>>, %arg2: memref<4x8xf32, #tpu.memory_space<vmem>>, %arg3: memref<4x32xf32, #tpu.memory_space<vmem>>, %arg4: memref<32x32xf32, #tpu.memory_space<vmem>>, %arg5: memref<1x32xf32, #tpu.memory_space<vmem>>, %arg6: memref<32x32xf32, #tpu.memory_space<vmem>>, %arg7: memref<32x32xf32, #tpu.memory_space<vmem>>, %arg8: memref<1x32xf32, #tpu.memory_space<vmem>>, %arg9: memref<32x128xf32, #tpu.memory_space<vmem>>, %arg10: memref<1x128xf32, #tpu.memory_space<vmem>>, %arg11: memref<4x128xf32, #tpu.memory_space<vmem>>) attributes {dimension_semantics = [#tpu.dimension_semantics<parallel>], iteration_bounds = array<i64: 1>, scalar_prefetch = 0 : i64, scratch_operands = 0 : i64, tpu.core_type = #tpu.core_type<tc>, window_params = [{transform_indices = @transform_0, window_bounds = array<i64: 32, 32>}, {transform_indices = @transform_1, window_bounds = array<i64: 4, 8>}, {transform_indices = @transform_2, window_bounds = array<i64: 4, 32>}, {pipeline_mode = #tpu.pipeline_mode<synchronous>, transform_indices = @transform_3, window_bounds = array<i64: 32, 32>}, {pipeline_mode = #tpu.pipeline_mode<synchronous>, transform_indices = @transform_4, window_bounds = array<i64: 1, 32>}, {pipeline_mode = #tpu.pipeline_mode<synchronous>, transform_indices = @transform_5, window_bounds = array<i64: 32, 32>}, {pipeline_mode = #tpu.pipeline_mode<synchronous>, transform_indices = @transform_6, window_bounds = array<i64: 32, 32>}, {pipeline_mode = #tpu.pipeline_mode<synchronous>, transform_indices = @transform_7, window_bounds = array<i64: 1, 32>}, {pipeline_mode = #tpu.pipeline_mode<synchronous>, transform_indices = @transform_8, window_bounds = array<i64: 32, 128>}, {pipeline_mode = #tpu.pipeline_mode<synchronous>, transform_indices = @transform_9, window_bounds = array<i64: 1, 128>}, {transform_indices = @transform_10, window_bounds = array<i64: 4, 128>}]} {
    %c0 = arith.constant 0 : index
    %c0_0 = arith.constant 0 : index
    %0 = vector.load %arg1[%c0, %c0_0] : memref<32x32xf32, #tpu.memory_space<vmem>>, vector<32x32xf32>
    %c0_1 = arith.constant 0 : index
    %c0_2 = arith.constant 0 : index
    %1 = vector.load %arg4[%c0_1, %c0_2] : memref<32x32xf32, #tpu.memory_space<vmem>>, vector<32x32xf32>
    %cst = arith.constant dense<0.000000e+00> : vector<32x32xf32>
    %2 = tpu.matmul %0, %1, %cst {dimension_numbers = #tpu.dot_dimension_numbers<[1], [0], [0], [1], [0, 0, 1, 1], [], []>} : vector<32x32xf32>, vector<32x32xf32>, vector<32x32xf32> -> vector<32x32xf32>
    %c0_3 = arith.constant 0 : index
    %c0_4 = arith.constant 0 : index
    %3 = vector.load %arg5[%c0_3, %c0_4] : memref<1x32xf32, #tpu.memory_space<vmem>>, vector<1x32xf32>
    %4 = vector.broadcast %3 : vector<1x32xf32> to vector<32x32xf32>
    %5 = arith.addf %2, %4 : vector<32x32xf32>
    %6 = vector.shape_cast %5 : vector<32x32xf32> to vector<4x8x32xf32>
    %c0_5 = arith.constant 0 : index
    %c0_6 = arith.constant 0 : index
    %7 = vector.load %arg2[%c0_5, %c0_6] : memref<4x8xf32, #tpu.memory_space<vmem>>, vector<4x8xf32>
    %8 = vector.shape_cast %7 : vector<4x8xf32> to vector<4x8x1xf32>
    %9 = vector.broadcast %8 : vector<4x8x1xf32> to vector<4x8x32xf32>
    %10 = arith.mulf %6, %9 : vector<4x8x32xf32>
    %cst_7 = arith.constant 0.000000e+00 : f32
    %11 = vector.broadcast %cst_7 : f32 to vector<4x8x32xf32>
    %12 = arith.maximumf %10, %11 : vector<4x8x32xf32>
    %cst_8 = arith.constant dense<0xFF800000> : vector<4x32xf32>
    %13 = vector.multi_reduction <maximumf>, %12, %cst_8 [1] : vector<4x8x32xf32> to vector<4x32xf32>
    %c0_9 = arith.constant 0 : index
    %c0_10 = arith.constant 0 : index
    %14 = vector.load %arg6[%c0_9, %c0_10] : memref<32x32xf32, #tpu.memory_space<vmem>>, vector<32x32xf32>
    %cst_11 = arith.constant dense<0.000000e+00> : vector<4x32xf32>
    %15 = tpu.matmul %13, %14, %cst_11 {dimension_numbers = #tpu.dot_dimension_numbers<[1], [0], [0], [1], [0, 0, 1, 1], [], []>} : vector<4x32xf32>, vector<32x32xf32>, vector<4x32xf32> -> vector<4x32xf32>
    %c0_12 = arith.constant 0 : index
    %c0_13 = arith.constant 0 : index
    %16 = vector.load %arg3[%c0_12, %c0_13] : memref<4x32xf32, #tpu.memory_space<vmem>>, vector<4x32xf32>
    %c0_14 = arith.constant 0 : index
    %c0_15 = arith.constant 0 : index
    %17 = vector.load %arg7[%c0_14, %c0_15] : memref<32x32xf32, #tpu.memory_space<vmem>>, vector<32x32xf32>
    %cst_16 = arith.constant dense<0.000000e+00> : vector<4x32xf32>
    %18 = tpu.matmul %16, %17, %cst_16 {dimension_numbers = #tpu.dot_dimension_numbers<[1], [0], [0], [1], [0, 0, 1, 1], [], []>} : vector<4x32xf32>, vector<32x32xf32>, vector<4x32xf32> -> vector<4x32xf32>
    %19 = arith.addf %15, %18 : vector<4x32xf32>
    %c0_17 = arith.constant 0 : index
    %c0_18 = arith.constant 0 : index
    %20 = vector.load %arg8[%c0_17, %c0_18] : memref<1x32xf32, #tpu.memory_space<vmem>>, vector<1x32xf32>
    %21 = vector.broadcast %20 : vector<1x32xf32> to vector<4x32xf32>
    %22 = arith.addf %19, %21 : vector<4x32xf32>
    %cst_19 = arith.constant 0.000000e+00 : f32
    %23 = vector.broadcast %cst_19 : f32 to vector<4x32xf32>
    %24 = arith.maximumf %22, %23 : vector<4x32xf32>
    %c0_20 = arith.constant 0 : index
    %c0_21 = arith.constant 0 : index
    %25 = vector.load %arg9[%c0_20, %c0_21] : memref<32x128xf32, #tpu.memory_space<vmem>>, vector<32x128xf32>
    %cst_22 = arith.constant dense<0.000000e+00> : vector<4x128xf32>
    %26 = tpu.matmul %24, %25, %cst_22 {dimension_numbers = #tpu.dot_dimension_numbers<[1], [0], [0], [1], [0, 0, 1, 1], [], []>} : vector<4x32xf32>, vector<32x128xf32>, vector<4x128xf32> -> vector<4x128xf32>
    %c0_23 = arith.constant 0 : index
    %c0_24 = arith.constant 0 : index
    %27 = vector.load %arg10[%c0_23, %c0_24] : memref<1x128xf32, #tpu.memory_space<vmem>>, vector<1x128xf32>
    %28 = vector.broadcast %27 : vector<1x128xf32> to vector<4x128xf32>
    %29 = arith.addf %26, %28 : vector<4x128xf32>
    %c0_25 = arith.constant 0 : index
    %c0_26 = arith.constant 0 : index
    %30 = vector.load %arg11[%c0_25, %c0_26] : memref<4x128xf32, #tpu.memory_space<vmem>>, vector<4x128xf32>
    tpu.vector_store %arg11[%c0_25, %c0_26], %29 {strides = array<i32>} : memref<4x128xf32, #tpu.memory_space<vmem>>, vector<4x128xf32>,
    return
  }
  func.func @transform_0(%arg0: i32) -> (i32, i32) {
    %c0_i32 = arith.constant 0 : i32
    %c0_i32_0 = arith.constant 0 : i32
    return %arg0, %c0_i32 : i32, i32
  }
  func.func @transform_1(%arg0: i32) -> (i32, i32) {
    %c0_i32 = arith.constant 0 : i32
    %c0_i32_0 = arith.constant 0 : i32
    return %arg0, %c0_i32 : i32, i32
  }
  func.func @transform_2(%arg0: i32) -> (i32, i32) {
    %c0_i32 = arith.constant 0 : i32
    %c0_i32_0 = arith.constant 0 : i32
    return %arg0, %c0_i32 : i32, i32
  }
  func.func @transform_3(%arg0: i32) -> (i32, i32) {
    %c0_i32 = arith.constant 0 : i32
    %c0_i32_0 = arith.constant 0 : i32
    %c0_i32_1 = arith.constant 0 : i32
    return %c0_i32, %c0_i32_0 : i32, i32
  }
  func.func @transform_4(%arg0: i32) -> (i32, i32) {
    %c0_i32 = arith.constant 0 : i32
    %c0_i32_0 = arith.constant 0 : i32
    %c0_i32_1 = arith.constant 0 : i32
    return %c0_i32, %c0_i32_0 : i32, i32
  }
  func.func @transform_5(%arg0: i32) -> (i32, i32) {
    %c0_i32 = arith.constant 0 : i32
    %c0_i32_0 = arith.constant 0 : i32
    %c0_i32_1 = arith.constant 0 : i32
    return %c0_i32, %c0_i32_0 : i32, i32
  }
  func.func @transform_6(%arg0: i32) -> (i32, i32) {
    %c0_i32 = arith.constant 0 : i32
    %c0_i32_0 = arith.constant 0 : i32
    %c0_i32_1 = arith.constant 0 : i32
    return %c0_i32, %c0_i32_0 : i32, i32
  }
  func.func @transform_7(%arg0: i32) -> (i32, i32) {
    %c0_i32 = arith.constant 0 : i32
    %c0_i32_0 = arith.constant 0 : i32
    %c0_i32_1 = arith.constant 0 : i32
    return %c0_i32, %c0_i32_0 : i32, i32
  }
  func.func @transform_8(%arg0: i32) -> (i32, i32) {
    %c0_i32 = arith.constant 0 : i32
    %c0_i32_0 = arith.constant 0 : i32
    %c0_i32_1 = arith.constant 0 : i32
    return %c0_i32, %c0_i32_0 : i32, i32
  }
  func.func @transform_9(%arg0: i32) -> (i32, i32) {
    %c0_i32 = arith.constant 0 : i32
    %c0_i32_0 = arith.constant 0 : i32
    %c0_i32_1 = arith.constant 0 : i32
    return %c0_i32, %c0_i32_0 : i32, i32
  }
  func.func @transform_10(%arg0: i32) -> (i32, i32) {
    %c0_i32 = arith.constant 0 : i32
    %c0_i32_0 = arith.constant 0 : i32
    return %arg0, %c0_i32 : i32, i32
  }
}

</mosaic_0001>

<bundles_post_ra>
// kernel: tpu_custom_call.1
= control target key start
LH: loop header
LB: loop body
LE: loop exit
PB: predicated region body
PF: predicated region fallthrough
CT: control target
= control target key end

     0   :  { %15 = vsyncpa [#allocation3], 0  ;;  %s1047_s0 = inlined_call_operand.hbm [shape: f32[32,32], index: 0, kind: input, shape index: {}]   ;;  %s1048_s1 = inlined_call_operand.hbm [shape: f32[4,8], index: 1, kind: input, shape index: {}]   ;;  %s1049_s2 = inlined_call_operand.vmem [shape: f32[4,32], index: 2, kind: input, shape index: {}]   ;;  %s1050_s3 = inlined_call_operand.hbm [shape: f32[32,32], index: 3, kind: input, shape index: {}]   ;;  %s1051_s4 = inlined_call_operand.vmem [shape: f32[1,32], index: 4, kind: input, shape index: {}]   ;;  %s1052_s5 = inlined_call_operand.hbm [shape: f32[32,32], index: 5, kind: input, shape index: {}]   ;;  %s1053_s6 = inlined_call_operand.hbm [shape: f32[32,32], index: 6, kind: input, shape index: {}]   ;;  %s1054_s7 = inlined_call_operand.vmem [shape: f32[1,32], index: 7, kind: input, shape index: {}]   ;;  %s1055_s8 = inlined_call_operand.hbm [shape: f32[32,128], index: 8, kind: input, shape index: {}]   ;;  %s1056_s9 = inlined_call_operand.vmem [shape: f32[1,128], index: 9, kind: input, shape index: {}]   ;;  %s1057_s10 = inlined_call_operand.hbm [shape: f32[4,128], index: 10, kind: output, shape index: {}]  }
   0x1   :  { %16 = vsyncpa [#allocation6], 0 }
   0x2   :  { %17 = vsyncpa [#allocation9], 0 }
   0x3   :  { %18 = vsyncpa [#allocation12], 0 }
   0x4   :  { %19 = vsyncpa [#allocation4], 0  ;;  %s852_s13 = smov [#allocation5]   ;;  %s688_s17 = scalar_lea.hbm %s1048_s1, 64 }
   0x5   :  { %s38_s14 = sshll.u32 %s852_s13, 4  ;;  %p689_p0 = scmp.ne.s32.totalorder %s1048_s1, %s688_s17  ;;  %s39_s14 = int_to_ptr.vmem [resolvable:$true] %s38_s14 }
   0x6   :  { %p692_p1 = scmp.lt.u32.totalorder %s688_s17, %s1048_s1 }
   0x8   :  { %p694_p2 = pnand %p692_p1, %p689_p0 }
   0xa   :  { %697 = shalt.err (!%p694_p2)
}
   0xb   :  { %s698_s22 = scalar_lea.vmem %s39_s14, 64  ;;  %p703_p4 = scmp.lt.s32.totalorder %s39_s14, %s39_s14 }
   0xc   :  { %p699_p3 = scmp.ne.s32.totalorder %s39_s14, %s698_s22  ;;  %p704_p5 = scmp.lt.s32.totalorder %s698_s22, %s698_s22 }
   0xe   :  { %p705_p6 = por %p704_p5, %p703_p4 }
  0x10   :  { %p706_p7 = pnand %p705_p6, %p699_p3 }
  0x12   :  { %709 = shalt.err (!%p706_p7)
}
  0x13   :  { %41 = dma.hbm_to_vmem [thread:$0]  %s1048_s1, 64, %s39_s14, [#allocation6]  }
  0x14   :  { %s853_s25 = smov [#allocation8]   ;;  %s854_s27 = smov [#allocation2]  }
  0x15   :  { %s63_s26 = sshll.u32 %s853_s25, 4  ;;  %s25_s28 = sshll.u32 %s854_s27, 4  ;;  %s64_s26 = int_to_ptr.vmem [resolvable:$true] %s63_s26  ;;  %s26_s28 = int_to_ptr.vmem [resolvable:$true] %s25_s28 }
  0x16   :  { %s710_s11 = scalar_lea.hbm %s1052_s5, 512 }
  0x17   :  { %p711_p8 = scmp.ne.s32.totalorder %s1052_s5, %s710_s11  ;;  %p714_p9 = scmp.lt.u32.totalorder %s710_s11, %s1052_s5 }
  0x19   :  { %p716_p10 = pnand %p714_p9, %p711_p8 }
  0x1b   :  { %719 = shalt.err (!%p716_p10)
}
  0x1c   :  { %s720_s1 = scalar_lea.vmem %s64_s26, 512  ;;  %p725_p12 = scmp.lt.s32.totalorder %s64_s26, %s64_s26 }
  0x1d   :  { %p721_p11 = scmp.ne.s32.totalorder %s64_s26, %s720_s1  ;;  %p726_p13 = scmp.lt.s32.totalorder %s720_s1, %s720_s1 }
  0x1f   :  { %p727_p0 = por %p726_p13, %p725_p12 }
  0x21   :  { %p728_p1 = pnand %p727_p0, %p721_p11 }
  0x23   :  { %731 = shalt.err (!%p728_p1)
}
  0x24   :  { %s855_s14 = smov 128   ;;  %s856_s17 = smov 8  }
  0x25   :  { %69 = dma.hbm_to_vmem [thread:$0]  %s1052_s5, 512, %s64_s26, [#allocation9], %s855_s14, %s855_s14, %s856_s17  }
  0x26   :  { %s732_s22 = scalar_lea.hbm %s1047_s0, 512 }
  0x27   :  { %p733_p2 = scmp.ne.s32.totalorder %s1047_s0, %s732_s22  ;;  %p736_p3 = scmp.lt.u32.totalorder %s732_s22, %s1047_s0 }
  0x29   :  { %p738_p4 = pnand %p736_p3, %p733_p2 }
  0x2b   :  { %741 = shalt.err (!%p738_p4)
}
  0x2c   :  { %s742_s29 = scalar_lea.vmem %s26_s28, 512  ;;  %p747_p6 = scmp.lt.s32.totalorder %s26_s28, %s26_s28 }
  0x2d   :  { %p743_p5 = scmp.ne.s32.totalorder %s26_s28, %s742_s29  ;;  %p748_p7 = scmp.lt.s32.totalorder %s742_s29, %s742_s29 }
  0x2f   :  { %p749_p8 = por %p748_p7, %p747_p6 }
  0x31   :  { %p750_p9 = pnand %p749_p8, %p743_p5 }
  0x33   :  { %753 = shalt.err (!%p750_p9)
}
  0x34   :  { %31 = dma.hbm_to_vmem [thread:$0]  %s1047_s0, 512, %s26_s28, [#allocation3], %s855_s14, %s855_s14, %s856_s17  }
  0x35   :  { %s857_s30 = smov [#allocation7]   ;;  %s858_s12 = smov [#allocation10]  }
  0x36   :  { %s49_s11 = sshll.u32 %s857_s30, 4  ;;  %s75_s13 = sshll.u32 %s858_s12, 4  ;;  %s50_s11 = int_to_ptr.vmem [resolvable:$true] %s49_s11  ;;  %s76_s13 = int_to_ptr.vmem [resolvable:$true] %s75_s13 }
  0x37   :  { %s754_s1 = scalar_lea.hbm %s1050_s3, 512 }
  0x38   :  { %p755_p10 = scmp.ne.s32.totalorder %s1050_s3, %s754_s1  ;;  %p758_p11 = scmp.lt.u32.totalorder %s754_s1, %s1050_s3 }
  0x3a   :  { %p760_p12 = pnand %p758_p11, %p755_p10 }
  0x3c   :  { %763 = shalt.err (!%p760_p12)
}
  0x3d   :  { %s764_s0 = scalar_lea.vmem %s50_s11, 512  ;;  %p769_p0 = scmp.lt.s32.totalorder %s50_s11, %s50_s11 }
  0x3e   :  { %p765_p13 = scmp.ne.s32.totalorder %s50_s11, %s764_s0  ;;  %p770_p1 = scmp.lt.s32.totalorder %s764_s0, %s764_s0 }
  0x40   :  { %p771_p2 = por %p770_p1, %p769_p0 }
  0x42   :  { %p772_p3 = pnand %p771_p2, %p765_p13 }
  0x44   :  { %775 = shalt.err (!%p772_p3)
}
  0x45   :  { %55 = dma.hbm_to_vmem [thread:$0]  %s1050_s3, 512, %s50_s11, [#allocation6], %s855_s14, %s855_s14, %s856_s17  }
  0x46   :  { %s776_s25 = scalar_lea.hbm %s1053_s6, 512 }
  0x47   :  { %p777_p4 = scmp.ne.s32.totalorder %s1053_s6, %s776_s25  ;;  %p780_p5 = scmp.lt.u32.totalorder %s776_s25, %s1053_s6 }
  0x49   :  { %p782_p6 = pnand %p780_p5, %p777_p4 }
  0x4b   :  { %785 = shalt.err (!%p782_p6)
}
  0x4c   :  { %s786_s30 = scalar_lea.vmem %s76_s13, 512  ;;  %p791_p8 = scmp.lt.s32.totalorder %s76_s13, %s76_s13 }
  0x4d   :  { %p787_p7 = scmp.ne.s32.totalorder %s76_s13, %s786_s30  ;;  %p792_p9 = scmp.lt.s32.totalorder %s786_s30, %s786_s30 }
  0x4f   :  { %p793_p10 = por %p792_p9, %p791_p8 }
  0x51   :  { %p794_p11 = pnand %p793_p10, %p787_p7 }
  0x53   :  { %797 = shalt.err (!%p794_p11)
}
  0x54   :  { %81 = dma.hbm_to_vmem [thread:$0]  %s1053_s6, 512, %s76_s13, [#allocation9], %s855_s14, %s855_s14, %s856_s17  }
  0x55   :  { %s859_s12 = smov [#allocation11]   ;;  %s798_s18 = scalar_lea.hbm %s1055_s8, 512 }
  0x56   :  { %s89_s15 = sshll.u32 %s859_s12, 4  ;;  %p799_p12 = scmp.ne.s32.totalorder %s1055_s8, %s798_s18  ;;  %s90_s15 = int_to_ptr.vmem [resolvable:$true] %s89_s15 }
  0x57   :  { %p802_p13 = scmp.lt.u32.totalorder %s798_s18, %s1055_s8 }
  0x59   :  { %p804_p0 = pnand %p802_p13, %p799_p12 }
  0x5b   :  { %807 = shalt.err (!%p804_p0)
}
  0x5c   :  { %s808_s28 = scalar_lea.vmem %s90_s15, 512  ;;  %p813_p2 = scmp.lt.s32.totalorder %s90_s15, %s90_s15 }
  0x5d   :  { %p809_p1 = scmp.ne.s32.totalorder %s90_s15, %s808_s28  ;;  %p814_p3 = scmp.lt.s32.totalorder %s808_s28, %s808_s28 }
  0x5f   :  { %p815_p4 = por %p814_p3, %p813_p2 }
  0x61   :  { %p816_p5 = pnand %p815_p4, %p809_p1 }
  0x63   :  { %819 = shalt.err (!%p816_p5)
}
  0x64   :  { %95 = dma.hbm_to_vmem [thread:$0]  %s1055_s8, 512, %s90_s15, [#allocation12], %s855_s14, %s855_s14, %s856_s17  }
  0x65   :  { %842 = dma.done.wait [#allocation3], 512  }
  0x66   :  { %843 = vsyncadd [#allocation3], 4294966784 }
  0x67   :  { %844 = dma.done.wait [#allocation6], 576  }
  0x68   :  { %845 = vsyncadd [#allocation6], 4294966720 }
  0x69   :  { %846 = dma.done.wait [#allocation9], 1024  }
  0x6a   :  { %847 = vsyncadd [#allocation9], 4294966272 }
  0x6b   :  { %848 = dma.done.wait [#allocation12], 512  }
  0x6c   :  { %849 = vsyncadd [#allocation12], 4294966784  ;;  %v230_v0 = vlaneseq  ;;  %vm131_vm0 = vcmask 261120   ;;  %v120_v4 = vld [vmem:[#allocation7] sm:$0xff]  ;;  %v121_v5 = vld [vmem:[#allocation7 + $0x8] sm:$0xff]  ;;  %v860_v26 = vmov 0.0|0.0  }
  0x6d   :  { %v122_v6 = vld [vmem:[#allocation7 + $0x10] sm:$0xff]  ;;  %v650_v7 = vpack.c.bf16 %v121_v5, %v120_v4  ;;  %v123_v8 = vld [vmem:[#allocation7 + $0x18] sm:$0xff]  ;;  %v117_v18 = vld [vmem:[#allocation2 + $0x8] sm:$0xff]  ;;  %658 = vmatprep.subr.bf16.mxu1 %v860_v26  ;;  %vm861_vm1 = vmmov 0   ;;  %v862_v35 = vmov 0.0   ;;  %vm380_vm2 = vcmask 1041409  }
  0x6e   :  { %v231_v1 = vshrl.u32 %v230_v0, 7  ;;  %v116_v9 = vld [vmem:[#allocation2] sm:$0xff]  ;;  %v654_v11 = vpack.c.bf16 %v123_v8, %v122_v6  ;;  %v118_v19 = vld [vmem:[#allocation2 + $0x10] sm:$0xff]  ;;  %v119_v20 = vld [vmem:[#allocation2 + $0x18] sm:$0xff]  ;;  %625 = vmatprep.mubr.msk.f32.mxu1 %vm861_vm1, %v862_v35  ;;  %vm382_vm3 = vcmask 1042434   ;;  %vm384_vm4 = vcmask 1043459  }
  0x6f   :  { %611 = vmatprep.mubr.msk.f32.mxu0 %vm131_vm0, %v116_v9  ;;  %v229_v12 = vld [vmem:[#allocation5] sm:$0xf]  ;;  %651 = vmatprep.subr.bf16.mxu0 %v650_v7  ;;  %v299_v21 = vld [vmem:[#allocation10] sm:$0xff]  ;;  %v300_v22 = vld [vmem:[#allocation10 + $0x8] sm:$0xff]  ;;  %s863_s25 = smov [#allocation13]  }
  0x70   :  { %v232_v2 = vsub.s32 0, %v231_v1  ;;  %v246_v3 = vsub.s32 2, %v231_v1  ;;  %v239_v10 = vsub.s32 1, %v231_v1  ;;  %v253_v13 = vsub.s32 3, %v231_v1  ;;  %653 = vmatpush3.bf16.msra.mxu0 %v650_v7  ;;  %v294_v24 = vld [vmem:[#allocation8] sm:$0xff]  ;;  %v295_v25 = vld [vmem:[#allocation8 + $0x8] sm:$0xff] }
  0x71   :  { %655 = vmatprep.subr.bf16.mxu0 %v654_v11  ;;  %v659_v23 = vpack.c.bf16 %v300_v22, %v299_v21  ;;  %v665_v27 = vpack.c.bf16 %v295_v25, %v294_v24  ;;  %v301_v28 = vld [vmem:[#allocation10 + $0x10] sm:$0xff]  ;;  %v302_v29 = vld [vmem:[#allocation10 + $0x18] sm:$0xff]  ;;  %v467_v24 = vld [vmem:[#allocation11] sm:$0xff]  ;;  %s558_s27 = sshll.u32 %s863_s25, 4  ;;  %s559_s27 = int_to_ptr.vmem [resolvable:$true] %s558_s27 }
  0x72   :  { %v233_v14 = vrot.slane %v229_v12, %v232_v2  ;;  %v247_v15 = vrot.slane %v229_v12, %v246_v3  ;;  %v240_v16 = vrot.slane %v229_v12, %v239_v10  ;;  %v254_v17 = vrot.slane %v229_v12, %v253_v13  ;;  %v296_v31 = vld [vmem:[#allocation8 + $0x10] sm:$0xff]  ;;  %v297_v32 = vld [vmem:[#allocation8 + $0x18] sm:$0xff]  ;;  %v468_v25 = vld [vmem:[#allocation11 + $0x8] sm:$0xff]  ;;  %s820_s29 = scalar_lea.vmem %s559_s27, 64  ;;  %p825_p7 = scmp.lt.s32.totalorder %s559_s27, %s559_s27 }
  0x73   :  { %660 = vmatpush3.bf16.msra.mxu1 %v659_v23  ;;  %v662_v30 = vpack.c.bf16 %v302_v29, %v301_v28  ;;  %v668_v33 = vpack.c.bf16 %v297_v32, %v296_v31  ;;  %v298_v34 = vld [vmem:[%s1049_s2] sm:$0xf]  ;;  %p821_p6 = scmp.ne.s32.totalorder %s559_s27, %s820_s29  ;;  %p826_p8 = scmp.lt.s32.totalorder %s820_s29, %s820_s29 }
  0x74   :  { %235 = vbcast.lane.b32.xlu0 %v233_v14, 256  ;;  %249 = vbcast.lane.b32.xlu1 %v247_v15, 256  ;;  %v570_v37 = vld [vmem:[%s1051_s4] ss:$0 sm:$0xff] }
  0x75   :  { %657 = vmatpush3.bf16.msra.mxu0 %v654_v11  ;;  %661 = vmatprep.subr.bf16.mxu1 %v860_v26  ;;  %v470_v31 = vld [vmem:[#allocation11 + $0x18] sm:$0xff]  ;;  %p827_p9 = por %p826_p8, %p825_p7 }
  0x76   :  { %664 = vmatprep.subr.bf16.mxu0 %v860_v26 }
  0x77   :  { %663 = vmatpush3.bf16.msra.mxu1 %v662_v30  ;;  %v469_v30 = vld [vmem:[#allocation11 + $0x10] sm:$0xff]  ;;  %p828_p10 = pnand %p827_p9, %p821_p6 }
  0x78   :  { %242 = vbcast.lane.b32.xlu0 %v240_v16, 256  ;;  %256 = vbcast.lane.b32.xlu1 %v254_v17, 256  ;;  %v674_v32 = vpack.c.bf16 %v470_v31, %v469_v30 }
  0x79   :  { %612 = vmatmul.mubr.msk.f32.vlgmr.msra.gmra.mrb[0].mxu0 %vm131_vm0, %v117_v18  ;;  %670 = vmatprep.subr.bf16.mxu1 %v860_v26 }
  0x7a   :  { %614 = vmatprep.mubr.msk.f32.mxu0 %vm131_vm0, %v118_v19  ;;  %666 = vmatpush3.bf16.msra.mxu0 %v665_v27  ;;  %v671_v27 = vpack.c.bf16 %v468_v25, %v467_v24 }
  0x7b   :  { %667 = vmatprep.subr.bf16.mxu0 %v860_v26  ;;  %626 = vmatmul.mubr.msk.f32.vlgmr.msra.gmra.mrb[0].mxu1 %vm131_vm0, %v298_v34  ;;  %v577_v34 = vld [vmem:[%s1054_s7] ss:$0 sm:$0xff] }
  0x7c   :  { %647 = vmatprep.mubr.msk.f32.mxu1 %vm861_vm1, %v862_v35  ;;  %672 = vmatpush3.bf16.msra.mxu1 %v671_v27 }
  0x7d   :  { %615 = vmatmul.mubr.msk.f32.gmra.mrb[2].mxu0 %vm131_vm0, %v119_v20  ;;  %673 = vmatprep.subr.bf16.mxu1 %v860_v26 }
  0x7e   :  { %669 = vmatpush3.bf16.msra.mxu0 %v668_v33  ;;  %636 = vmatprep.mubr.msk.f32.mxu0 %vm861_vm1, %v862_v35 }
  0x80   :  { %675 = vmatpush3.bf16.msra.mxu1 %v674_v32 }
  0xe6   :  { %v236_v36 = vpop.permute.xlu0 %235  ;;  %v250_v38 = vpop.permute.xlu1 %249 }
  0xea   :  { %v243_v40 = vpop.permute.xlu0 %242  ;;  %v257_v47 = vpop.permute.xlu1 %256 }
 0x14c   :  { %v613_v39 = vpop.f32.mrb[0].mxu0 }
 0x14d   :  { %v216_v41 = vadd.f32 %v613_v39, %v570_v37  ;;  %v210_v42 = vpop.f32.mrb[1].mxu0  ;;  %v578_v39 = vld [vmem:[%s1056_s9] ss:$0 sm:$0xff] }
 0x14e   :  { %v211_v43 = vadd.f32 %v570_v37, %v210_v42  ;;  %v372_v28 = vpop.f32.mrb[0].mxu1 }
 0x14f   :  { %v259_v44 = vmul.f32 %v243_v40, %v216_v41  ;;  %v627_v29 = vpop.f32.mrb[1].mxu1 }
 0x150   :  { %v258_v45 = vmul.f32 %v236_v36, %v211_v43  ;;  %v616_v46 = vpop.f32.mrb[2].mxu0 }
 0x151   :  { %v263_v48 = vmax.f32 %v259_v44, 0.0  ;;  %v226_v49 = vadd.f32 %v616_v46, %v570_v37  ;;  %v220_v50 = vpop.f32.mrb[3].mxu0 }
 0x152   :  { %v262_v51 = vmax.f32 %v258_v45, 0.0  ;;  %v221_v52 = vadd.f32 %v570_v37, %v220_v50 }
 0x153   :  { %v273_v53 = vsel %vm131_vm0, %v263_v48, -inf  ;;  %v261_v54 = vmul.f32 %v257_v47, %v226_v49 }
 0x154   :  { %v266_v55 = vsel %vm131_vm0, %v262_v51, -inf  ;;  %v274_v56 = vrot.slane %v273_v53, 4  ;;  %v260_v57 = vmul.f32 %v250_v38, %v221_v52 }
 0x155   :  { %v267_v58 = vrot.slane %v266_v55, 4  ;;  %v265_v59 = vmax.f32 %v261_v54, 0.0 }
 0x156   :  { %v275_v60 = vmax.f32 %v273_v53, %v274_v56  ;;  %v264_v61 = vmax.f32 %v260_v57, 0.0 }
 0x157   :  { %v268_v62 = vmax.f32 %v266_v55, %v267_v58  ;;  %v287_v63 = vsel %vm131_vm0, %v265_v59, -inf }
 0x158   :  { %v276_v0 = vrot.slane %v275_v60, 2  ;;  %v280_v1 = vsel %vm131_vm0, %v264_v61, -inf  ;;  %v288_v2 = vrot.slane %v287_v63, 4 }
 0x159   :  { %v269_v3 = vrot.slane %v268_v62, 2  ;;  %v281_v4 = vrot.slane %v280_v1, 4 }
 0x15a   :  { %v277_v5 = vmax.f32 %v275_v60, %v276_v0  ;;  %v289_v6 = vmax.f32 %v287_v63, %v288_v2 }
 0x15b   :  { %v270_v7 = vmax.f32 %v268_v62, %v269_v3  ;;  %v282_v8 = vmax.f32 %v280_v1, %v281_v4 }
 0x15c   :  { %v278_v9 = vrot.slane %v277_v5, 1  ;;  %v290_v10 = vrot.slane %v289_v6, 2 }
 0x15d   :  { %v271_v11 = vrot.slane %v270_v7, 1  ;;  %v283_v12 = vrot.slane %v282_v8, 2 }
 0x15e   :  { %v279_v13 = vmax.f32 %v277_v5, %v278_v9  ;;  %v291_v14 = vmax.f32 %v289_v6, %v290_v10 }
 0x15f   :  { %v272_v15 = vmax.f32 %v270_v7, %v271_v11  ;;  %v284_v16 = vmax.f32 %v282_v8, %v283_v12 }
 0x160   :  { %v292_v17 = vrot.slane %v291_v14, 1 }
 0x161   :  { %v381_v18 = vsel %vm380_vm2, %v279_v13, %v272_v15  ;;  %v285_v19 = vrot.slane %v284_v16, 1 }
 0x162   :  { %v293_v21 = vmax.f32 %v291_v14, %v292_v17 }
 0x163   :  { %v286_v20 = vmax.f32 %v284_v16, %v285_v19 }
 0x165   :  { %v383_v22 = vsel %vm382_vm3, %v286_v20, %v381_v18 }
 0x166   :  { %v385_v23 = vsel %vm384_vm4, %v293_v21, %v383_v22 }
 0x167   :  { %637 = vmatmul.mubr.msk.f32.vlgmr.msra.gmra.mrb[4].mxu0 %vm131_vm0, %v385_v23 }
 0x23a   :  { %v454_v33 = vpop.f32.mrb[4].mxu0 }
 0x23b   :  { %v455_v35 = vadd.f32 %v454_v33, %v372_v28  ;;  %v638_v36 = vpop.f32.mrb[5].mxu0 }
 0x23d   :  { %v465_v37 = vadd.f32 %v577_v34, %v455_v35 }
 0x23f   :  { %v466_v38 = vmax.f32 %v465_v37, 0.0 }
 0x241   :  { %648 = vmatmul.mubr.msk.f32.vlgmr.msra.gmra.mrb[2].mxu1 %vm131_vm0, %v466_v38 }
 0x314   :  { %v547_v26 = vpop.f32.mrb[2].mxu1 }
 0x315   :  { %v548_v40 = vadd.f32 %v578_v39, %v547_v26  ;;  %v649_v41 = vpop.f32.mrb[3].mxu1 }
 0x317   :  { %551 = vst [vmem:[#allocation13] sm:$0xf] %v548_v40 }
 0x318   :  { %831 = shalt.err (!%p828_p10)
}
 0x319   :  { %s832_s26 = scalar_lea.hbm %s1057_s10, 64 }
 0x31a   :  { %p833_p11 = scmp.ne.s32.totalorder %s1057_s10, %s832_s26  ;;  %p836_p12 = scmp.lt.u32.totalorder %s832_s26, %s1057_s10 }
 0x31c   :  { %p838_p13 = pnand %p836_p12, %p833_p11 }
 0x31e   :  { %841 = shalt.err (!%p838_p13)
}
 0x31f   :  { %561 = dma.vmem_to_hbm [thread:$0]  %s559_s27, 64, %s1057_s10, [#allocation4]  }
 0x320   :  { %850 = dma.done.wait [#allocation4], 64  }
 0x321   :  { %851 = vsyncadd [#allocation4], 4294967232 }
 0x322   :  { %565 = vsyncpa [#allocation3], 1 }
 0x323   :  { %566 = vsyncpa [#allocation6], 1 }
 0x324   :  { %567 = vsyncpa [#allocation9], 1 }
 0x325   :  { %568 = vsyncpa [#allocation12], 1 }
 0x326   :  { %569 = vsyncpa [#allocation4], 1 }

// kernel: tpu_custom_call.1
= control target key start
LH: loop header
LB: loop body
LE: loop exit
PB: predicated region body
PF: predicated region fallthrough
CT: control target
= control target key end

     0   :  { %15 = vsyncpa [#allocation3], 0  ;;  %s1047_s0 = inlined_call_operand.hbm [shape: f32[32,32], index: 0, kind: input, shape index: {}]   ;;  %s1048_s1 = inlined_call_operand.hbm [shape: f32[4,8], index: 1, kind: input, shape index: {}]   ;;  %s1049_s2 = inlined_call_operand.vmem [shape: f32[4,32], index: 2, kind: input, shape index: {}]   ;;  %s1050_s3 = inlined_call_operand.hbm [shape: f32[32,32], index: 3, kind: input, shape index: {}]   ;;  %s1051_s4 = inlined_call_operand.vmem [shape: f32[1,32], index: 4, kind: input, shape index: {}]   ;;  %s1052_s5 = inlined_call_operand.hbm [shape: f32[32,32], index: 5, kind: input, shape index: {}]   ;;  %s1053_s6 = inlined_call_operand.hbm [shape: f32[32,32], index: 6, kind: input, shape index: {}]   ;;  %s1054_s7 = inlined_call_operand.vmem [shape: f32[1,32], index: 7, kind: input, shape index: {}]   ;;  %s1055_s8 = inlined_call_operand.hbm [shape: f32[32,128], index: 8, kind: input, shape index: {}]   ;;  %s1056_s9 = inlined_call_operand.vmem [shape: f32[1,128], index: 9, kind: input, shape index: {}]   ;;  %s1057_s10 = inlined_call_operand.hbm [shape: f32[4,128], index: 10, kind: output, shape index: {}]  }
   0x1   :  { %16 = vsyncpa [#allocation6], 0 }
   0x2   :  { %17 = vsyncpa [#allocation9], 0 }
   0x3   :  { %18 = vsyncpa [#allocation12], 0 }
   0x4   :  { %19 = vsyncpa [#allocation4], 0  ;;  %s852_s13 = smov [#allocation5]   ;;  %s688_s17 = scalar_lea.hbm %s1048_s1, 64 }
   0x5   :  { %s38_s14 = sshll.u32 %s852_s13, 4  ;;  %p689_p0 = scmp.ne.s32.totalorder %s1048_s1, %s688_s17  ;;  %s39_s14 = int_to_ptr.vmem [resolvable:$true] %s38_s14 }
   0x6   :  { %p692_p1 = scmp.lt.u32.totalorder %s688_s17, %s1048_s1 }
   0x8   :  { %p694_p2 = pnand %p692_p1, %p689_p0 }
   0xa   :  { %697 = shalt.err (!%p694_p2)
}
   0xb   :  { %s698_s22 = scalar_lea.vmem %s39_s14, 64  ;;  %p703_p4 = scmp.lt.s32.totalorder %s39_s14, %s39_s14 }
   0xc   :  { %p699_p3 = scmp.ne.s32.totalorder %s39_s14, %s698_s22  ;;  %p704_p5 = scmp.lt.s32.totalorder %s698_s22, %s698_s22 }
   0xe   :  { %p705_p6 = por %p704_p5, %p703_p4 }
  0x10   :  { %p706_p7 = pnand %p705_p6, %p699_p3 }
  0x12   :  { %709 = shalt.err (!%p706_p7)
}
  0x13   :  { %41 = dma.hbm_to_vmem [thread:$0]  %s1048_s1, 64, %s39_s14, [#allocation6]  }
  0x14   :  { %s853_s25 = smov [#allocation8]   ;;  %s854_s27 = smov [#allocation2]  }
  0x15   :  { %s63_s26 = sshll.u32 %s853_s25, 4  ;;  %s25_s28 = sshll.u32 %s854_s27, 4  ;;  %s64_s26 = int_to_ptr.vmem [resolvable:$true] %s63_s26  ;;  %s26_s28 = int_to_ptr.vmem [resolvable:$true] %s25_s28 }
  0x16   :  { %s710_s11 = scalar_lea.hbm %s1052_s5, 512 }
  0x17   :  { %p711_p8 = scmp.ne.s32.totalorder %s1052_s5, %s710_s11  ;;  %p714_p9 = scmp.lt.u32.totalorder %s710_s11, %s1052_s5 }
  0x19   :  { %p716_p10 = pnand %p714_p9, %p711_p8 }
  0x1b   :  { %719 = shalt.err (!%p716_p10)
}
  0x1c   :  { %s720_s1 = scalar_lea.vmem %s64_s26, 512  ;;  %p725_p12 = scmp.lt.s32.totalorder %s64_s26, %s64_s26 }
  0x1d   :  { %p721_p11 = scmp.ne.s32.totalorder %s64_s26, %s720_s1  ;;  %p726_p13 = scmp.lt.s32.totalorder %s720_s1, %s720_s1 }
  0x1f   :  { %p727_p0 = por %p726_p13, %p725_p12 }
  0x21   :  { %p728_p1 = pnand %p727_p0, %p721_p11 }
  0x23   :  { %731 = shalt.err (!%p728_p1)
}
  0x24   :  { %s855_s14 = smov 128   ;;  %s856_s17 = smov 8  }
  0x25   :  { %69 = dma.hbm_to_vmem [thread:$0]  %s1052_s5, 512, %s64_s26, [#allocation9], %s855_s14, %s855_s14, %s856_s17  }
  0x26   :  { %s732_s22 = scalar_lea.hbm %s1047_s0, 512 }
  0x27   :  { %p733_p2 = scmp.ne.s32.totalorder %s1047_s0, %s732_s22  ;;  %p736_p3 = scmp.lt.u32.totalorder %s732_s22, %s1047_s0 }
  0x29   :  { %p738_p4 = pnand %p736_p3, %p733_p2 }
  0x2b   :  { %741 = shalt.err (!%p738_p4)
}
  0x2c   :  { %s742_s29 = scalar_lea.vmem %s26_s28, 512  ;;  %p747_p6 = scmp.lt.s32.totalorder %s26_s28, %s26_s28 }
  0x2d   :  { %p743_p5 = scmp.ne.s32.totalorder %s26_s28, %s742_s29  ;;  %p748_p7 = scmp.lt.s32.totalorder %s742_s29, %s742_s29 }
  0x2f   :  { %p749_p8 = por %p748_p7, %p747_p6 }
  0x31   :  { %p750_p9 = pnand %p749_p8, %p743_p5 }
  0x33   :  { %753 = shalt.err (!%p750_p9)
}
  0x34   :  { %31 = dma.hbm_to_vmem [thread:$0]  %s1047_s0, 512, %s26_s28, [#allocation3], %s855_s14, %s855_s14, %s856_s17  }
  0x35   :  { %s857_s30 = smov [#allocation7]   ;;  %s858_s12 = smov [#allocation10]  }
  0x36   :  { %s49_s11 = sshll.u32 %s857_s30, 4  ;;  %s75_s13 = sshll.u32 %s858_s12, 4  ;;  %s50_s11 = int_to_ptr.vmem [resolvable:$true] %s49_s11  ;;  %s76_s13 = int_to_ptr.vmem [resolvable:$true] %s75_s13 }
  0x37   :  { %s754_s1 = scalar_lea.hbm %s1050_s3, 512 }
  0x38   :  { %p755_p10 = scmp.ne.s32.totalorder %s1050_s3, %s754_s1  ;;  %p758_p11 = scmp.lt.u32.totalorder %s754_s1, %s1050_s3 }
  0x3a   :  { %p760_p12 = pnand %p758_p11, %p755_p10 }
  0x3c   :  { %763 = shalt.err (!%p760_p12)
}
  0x3d   :  { %s764_s0 = scalar_lea.vmem %s50_s11, 512  ;;  %p769_p0 = scmp.lt.s32.totalorder %s50_s11, %s50_s11 }
  0x3e   :  { %p765_p13 = scmp.ne.s32.totalorder %s50_s11, %s764_s0  ;;  %p770_p1 = scmp.lt.s32.totalorder %s764_s0, %s764_s0 }
  0x40   :  { %p771_p2 = por %p770_p1, %p769_p0 }
  0x42   :  { %p772_p3 = pnand %p771_p2, %p765_p13 }
  0x44   :  { %775 = shalt.err (!%p772_p3)
}
  0x45   :  { %55 = dma.hbm_to_vmem [thread:$0]  %s1050_s3, 512, %s50_s11, [#allocation6], %s855_s14, %s855_s14, %s856_s17  }
  0x46   :  { %s776_s25 = scalar_lea.hbm %s1053_s6, 512 }
  0x47   :  { %p777_p4 = scmp.ne.s32.totalorder %s1053_s6, %s776_s25  ;;  %p780_p5 = scmp.lt.u32.totalorder %s776_s25, %s1053_s6 }
  0x49   :  { %p782_p6 = pnand %p780_p5, %p777_p4 }
  0x4b   :  { %785 = shalt.err (!%p782_p6)
}
  0x4c   :  { %s786_s30 = scalar_lea.vmem %s76_s13, 512  ;;  %p791_p8 = scmp.lt.s32.totalorder %s76_s13, %s76_s13 }
  0x4d   :  { %p787_p7 = scmp.ne.s32.totalorder %s76_s13, %s786_s30  ;;  %p792_p9 = scmp.lt.s32.totalorder %s786_s30, %s786_s30 }
  0x4f   :  { %p793_p10 = por %p792_p9, %p791_p8 }
  0x51   :  { %p794_p11 = pnand %p793_p10, %p787_p7 }
  0x53   :  { %797 = shalt.err (!%p794_p11)
}
  0x54   :  { %81 = dma.hbm_to_vmem [thread:$0]  %s1053_s6, 512, %s76_s13, [#allocation9], %s855_s14, %s855_s14, %s856_s17  }
  0x55   :  { %s859_s12 = smov [#allocation11]   ;;  %s798_s18 = scalar_lea.hbm %s1055_s8, 512 }
  0x56   :  { %s89_s15 = sshll.u32 %s859_s12, 4  ;;  %p799_p12 = scmp.ne.s32.totalorder %s1055_s8, %s798_s18  ;;  %s90_s15 = int_to_ptr.vmem [resolvable:$true] %s89_s15 }
  0x57   :  { %p802_p13 = scmp.lt.u32.totalorder %s798_s18, %s1055_s8 }
  0x59   :  { %p804_p0 = pnand %p802_p13, %p799_p12 }
  0x5b   :  { %807 = shalt.err (!%p804_p0)
}
  0x5c   :  { %s808_s28 = scalar_lea.vmem %s90_s15, 512  ;;  %p813_p2 = scmp.lt.s32.totalorder %s90_s15, %s90_s15 }
  0x5d   :  { %p809_p1 = scmp.ne.s32.totalorder %s90_s15, %s808_s28  ;;  %p814_p3 = scmp.lt.s32.totalorder %s808_s28, %s808_s28 }
  0x5f   :  { %p815_p4 = por %p814_p3, %p813_p2 }
  0x61   :  { %p816_p5 = pnand %p815_p4, %p809_p1 }
  0x63   :  { %819 = shalt.err (!%p816_p5)
}
  0x64   :  { %95 = dma.hbm_to_vmem [thread:$0]  %s1055_s8, 512, %s90_s15, [#allocation12], %s855_s14, %s855_s14, %s856_s17  }
  0x65   :  { %842 = dma.done.wait [#allocation3], 512  }
  0x66   :  { %843 = vsyncadd [#allocation3], 4294966784 }
  0x67   :  { %844 = dma.done.wait [#allocation6], 576  }
  0x68   :  { %845 = vsyncadd [#allocation6], 4294966720 }
  0x69   :  { %846 = dma.done.wait [#allocation9], 1024  }
  0x6a   :  { %847 = vsyncadd [#allocation9], 4294966272 }
  0x6b   :  { %848 = dma.done.wait [#allocation12], 512  }
  0x6c   :  { %849 = vsyncadd [#allocation12], 4294966784  ;;  %v230_v0 = vlaneseq  ;;  %vm131_vm0 = vcmask 261120   ;;  %v120_v4 = vld [vmem:[#allocation7] sm:$0xff]  ;;  %v121_v5 = vld [vmem:[#allocation7 + $0x8] sm:$0xff]  ;;  %v860_v26 = vmov 0.0|0.0  }
  0x6d   :  { %v122_v6 = vld [vmem:[#allocation7 + $0x10] sm:$0xff]  ;;  %v650_v7 = vpack.c.bf16 %v121_v5, %v120_v4  ;;  %v123_v8 = vld [vmem:[#allocation7 + $0x18] sm:$0xff]  ;;  %v117_v18 = vld [vmem:[#allocation2 + $0x8] sm:$0xff]  ;;  %658 = vmatprep.subr.bf16.mxu1 %v860_v26  ;;  %vm861_vm1 = vmmov 0   ;;  %v862_v35 = vmov 0.0   ;;  %vm380_vm2 = vcmask 1041409  }
  0x6e   :  { %v231_v1 = vshrl.u32 %v230_v0, 7  ;;  %v116_v9 = vld [vmem:[#allocation2] sm:$0xff]  ;;  %v654_v11 = vpack.c.bf16 %v123_v8, %v122_v6  ;;  %v118_v19 = vld [vmem:[#allocation2 + $0x10] sm:$0xff]  ;;  %v119_v20 = vld [vmem:[#allocation2 + $0x18] sm:$0xff]  ;;  %625 = vmatprep.mubr.msk.f32.mxu1 %vm861_vm1, %v862_v35  ;;  %vm382_vm3 = vcmask 1042434   ;;  %vm384_vm4 = vcmask 1043459  }
  0x6f   :  { %611 = vmatprep.mubr.msk.f32.mxu0 %vm131_vm0, %v116_v9  ;;  %v229_v12 = vld [vmem:[#allocation5] sm:$0xf]  ;;  %651 = vmatprep.subr.bf16.mxu0 %v650_v7  ;;  %v299_v21 = vld [vmem:[#allocation10] sm:$0xff]  ;;  %v300_v22 = vld [vmem:[#allocation10 + $0x8] sm:$0xff]  ;;  %s863_s25 = smov [#allocation13]  }
  0x70   :  { %v232_v2 = vsub.s32 0, %v231_v1  ;;  %v246_v3 = vsub.s32 2, %v231_v1  ;;  %v239_v10 = vsub.s32 1, %v231_v1  ;;  %v253_v13 = vsub.s32 3, %v231_v1  ;;  %653 = vmatpush3.bf16.msra.mxu0 %v650_v7  ;;  %v294_v24 = vld [vmem:[#allocation8] sm:$0xff]  ;;  %v295_v25 = vld [vmem:[#allocation8 + $0x8] sm:$0xff] }
  0x71   :  { %655 = vmatprep.subr.bf16.mxu0 %v654_v11  ;;  %v659_v23 = vpack.c.bf16 %v300_v22, %v299_v21  ;;  %v665_v27 = vpack.c.bf16 %v295_v25, %v294_v24  ;;  %v301_v28 = vld [vmem:[#allocation10 + $0x10] sm:$0xff]  ;;  %v302_v29 = vld [vmem:[#allocation10 + $0x18] sm:$0xff]  ;;  %v467_v24 = vld [vmem:[#allocation11] sm:$0xff]  ;;  %s558_s27 = sshll.u32 %s863_s25, 4  ;;  %s559_s27 = int_to_ptr.vmem [resolvable:$true] %s558_s27 }
  0x72   :  { %v233_v14 = vrot.slane %v229_v12, %v232_v2  ;;  %v247_v15 = vrot.slane %v229_v12, %v246_v3  ;;  %v240_v16 = vrot.slane %v229_v12, %v239_v10  ;;  %v254_v17 = vrot.slane %v229_v12, %v253_v13  ;;  %v296_v31 = vld [vmem:[#allocation8 + $0x10] sm:$0xff]  ;;  %v297_v32 = vld [vmem:[#allocation8 + $0x18] sm:$0xff]  ;;  %v468_v25 = vld [vmem:[#allocation11 + $0x8] sm:$0xff]  ;;  %s820_s29 = scalar_lea.vmem %s559_s27, 64  ;;  %p825_p7 = scmp.lt.s32.totalorder %s559_s27, %s559_s27 }
  0x73   :  { %660 = vmatpush3.bf16.msra.mxu1 %v659_v23  ;;  %v662_v30 = vpack.c.bf16 %v302_v29, %v301_v28  ;;  %v668_v33 = vpack.c.bf16 %v297_v32, %v296_v31  ;;  %v298_v34 = vld [vmem:[%s1049_s2] sm:$0xf]  ;;  %p821_p6 = scmp.ne.s32.totalorder %s559_s27, %s820_s29  ;;  %p826_p8 = scmp.lt.s32.totalorder %s820_s29, %s820_s29 }
  0x74   :  { %235 = vbcast.lane.b32.xlu0 %v233_v14, 256  ;;  %249 = vbcast.lane.b32.xlu1 %v247_v15, 256  ;;  %v570_v37 = vld [vmem:[%s1051_s4] ss:$0 sm:$0xff] }
  0x75   :  { %657 = vmatpush3.bf16.msra.mxu0 %v654_v11  ;;  %661 = vmatprep.subr.bf16.mxu1 %v860_v26  ;;  %v470_v31 = vld [vmem:[#allocation11 + $0x18] sm:$0xff]  ;;  %p827_p9 = por %p826_p8, %p825_p7 }
  0x76   :  { %664 = vmatprep.subr.bf16.mxu0 %v860_v26 }
  0x77   :  { %663 = vmatpush3.bf16.msra.mxu1 %v662_v30  ;;  %v469_v30 = vld [vmem:[#allocation11 + $0x10] sm:$0xff]  ;;  %p828_p10 = pnand %p827_p9, %p821_p6 }
  0x78   :  { %242 = vbcast.lane.b32.xlu0 %v240_v16, 256  ;;  %256 = vbcast.lane.b32.xlu1 %v254_v17, 256  ;;  %v674_v32 = vpack.c.bf16 %v470_v31, %v469_v30 }
  0x79   :  { %612 = vmatmul.mubr.msk.f32.vlgmr.msra.gmra.mrb[0].mxu0 %vm131_vm0, %v117_v18  ;;  %670 = vmatprep.subr.bf16.mxu1 %v860_v26 }
  0x7a   :  { %614 = vmatprep.mubr.msk.f32.mxu0 %vm131_vm0, %v118_v19  ;;  %666 = vmatpush3.bf16.msra.mxu0 %v665_v27  ;;  %v671_v27 = vpack.c.bf16 %v468_v25, %v467_v24 }
  0x7b   :  { %667 = vmatprep.subr.bf16.mxu0 %v860_v26  ;;  %626 = vmatmul.mubr.msk.f32.vlgmr.msra.gmra.mrb[0].mxu1 %vm131_vm0, %v298_v34  ;;  %v577_v34 = vld [vmem:[%s1054_s7] ss:$0 sm:$0xff] }
  0x7c   :  { %647 = vmatprep.mubr.msk.f32.mxu1 %vm861_vm1, %v862_v35  ;;  %672 = vmatpush3.bf16.msra.mxu1 %v671_v27 }
  0x7d   :  { %615 = vmatmul.mubr.msk.f32.gmra.mrb[2].mxu0 %vm131_vm0, %v119_v20  ;;  %673 = vmatprep.subr.bf16.mxu1 %v860_v26 }
  0x7e   :  { %669 = vmatpush3.bf16.msra.mxu0 %v668_v33  ;;  %636 = vmatprep.mubr.msk.f32.mxu0 %vm861_vm1, %v862_v35 }
  0x80   :  { %675 = vmatpush3.bf16.msra.mxu1 %v674_v32 }
  0xe6   :  { %v236_v36 = vpop.permute.xlu0 %235  ;;  %v250_v38 = vpop.permute.xlu1 %249 }
  0xea   :  { %v243_v40 = vpop.permute.xlu0 %242  ;;  %v257_v47 = vpop.permute.xlu1 %256 }
 0x14c   :  { %v613_v39 = vpop.f32.mrb[0].mxu0 }
 0x14d   :  { %v216_v41 = vadd.f32 %v613_v39, %v570_v37  ;;  %v210_v42 = vpop.f32.mrb[1].mxu0  ;;  %v578_v39 = vld [vmem:[%s1056_s9] ss:$0 sm:$0xff] }
 0x14e   :  { %v211_v43 = vadd.f32 %v570_v37, %v210_v42  ;;  %v372_v28 = vpop.f32.mrb[0].mxu1 }
 0x14f   :  { %v259_v44 = vmul.f32 %v243_v40, %v216_v41  ;;  %v627_v29 = vpop.f32.mrb[1].mxu1 }
 0x150   :  { %v258_v45 = vmul.f32 %v236_v36, %v211_v43  ;;  %v616_v46 = vpop.f32.mrb[2].mxu0 }
 0x151   :  { %v263_v48 = vmax.f32 %v259_v44, 0.0  ;;  %v226_v49 = vadd.f32 %v616_v46, %v570_v37  ;;  %v220_v50 = vpop.f32.mrb[3].mxu0 }
 0x152   :  { %v262_v51 = vmax.f32 %v258_v45, 0.0  ;;  %v221_v52 = vadd.f32 %v570_v37, %v220_v50 }
 0x153   :  { %v273_v53 = vsel %vm131_vm0, %v263_v48, -inf  ;;  %v261_v54 = vmul.f32 %v257_v47, %v226_v49 }
 0x154   :  { %v266_v55 = vsel %vm131_vm0, %v262_v51, -inf  ;;  %v274_v56 = vrot.slane %v273_v53, 4  ;;  %v260_v57 = vmul.f32 %v250_v38, %v221_v52 }
 0x155   :  { %v267_v58 = vrot.slane %v266_v55, 4  ;;  %v265_v59 = vmax.f32 %v261_v54, 0.0 }
 0x156   :  { %v275_v60 = vmax.f32 %v273_v53, %v274_v56  ;;  %v264_v61 = vmax.f32 %v260_v57, 0.0 }
 0x157   :  { %v268_v62 = vmax.f32 %v266_v55, %v267_v58  ;;  %v287_v63 = vsel %vm131_vm0, %v265_v59, -inf }
 0x158   :  { %v276_v0 = vrot.slane %v275_v60, 2  ;;  %v280_v1 = vsel %vm131_vm0, %v264_v61, -inf  ;;  %v288_v2 = vrot.slane %v287_v63, 4 }
 0x159   :  { %v269_v3 = vrot.slane %v268_v62, 2  ;;  %v281_v4 = vrot.slane %v280_v1, 4 }
 0x15a   :  { %v277_v5 = vmax.f32 %v275_v60, %v276_v0  ;;  %v289_v6 = vmax.f32 %v287_v63, %v288_v2 }
 0x15b   :  { %v270_v7 = vmax.f32 %v268_v62, %v269_v3  ;;  %v282_v8 = vmax.f32 %v280_v1, %v281_v4 }
 0x15c   :  { %v278_v9 = vrot.slane %v277_v5, 1  ;;  %v290_v10 = vrot.slane %v289_v6, 2 }
 0x15d   :  { %v271_v11 = vrot.slane %v270_v7, 1  ;;  %v283_v12 = vrot.slane %v282_v8, 2 }
 0x15e   :  { %v279_v13 = vmax.f32 %v277_v5, %v278_v9  ;;  %v291_v14 = vmax.f32 %v289_v6, %v290_v10 }
 0x15f   :  { %v272_v15 = vmax.f32 %v270_v7, %v271_v11  ;;  %v284_v16 = vmax.f32 %v282_v8, %v283_v12 }
 0x160   :  { %v292_v17 = vrot.slane %v291_v14, 1 }
 0x161   :  { %v381_v18 = vsel %vm380_vm2, %v279_v13, %v272_v15  ;;  %v285_v19 = vrot.slane %v284_v16, 1 }
 0x162   :  { %v293_v21 = vmax.f32 %v291_v14, %v292_v17 }
 0x163   :  { %v286_v20 = vmax.f32 %v284_v16, %v285_v19 }
 0x165   :  { %v383_v22 = vsel %vm382_vm3, %v286_v20, %v381_v18 }
 0x166   :  { %v385_v23 = vsel %vm384_vm4, %v293_v21, %v383_v22 }
 0x167   :  { %637 = vmatmul.mubr.msk.f32.vlgmr.msra.gmra.mrb[4].mxu0 %vm131_vm0, %v385_v23 }
 0x23a   :  { %v454_v33 = vpop.f32.mrb[4].mxu0 }
 0x23b   :  { %v455_v35 = vadd.f32 %v454_v33, %v372_v28  ;;  %v638_v36 = vpop.f32.mrb[5].mxu0 }
 0x23d   :  { %v465_v37 = vadd.f32 %v577_v34, %v455_v35 }
 0x23f   :  { %v466_v38 = vmax.f32 %v465_v37, 0.0 }
 0x241   :  { %648 = vmatmul.mubr.msk.f32.vlgmr.msra.gmra.mrb[2].mxu1 %vm131_vm0, %v466_v38 }
 0x314   :  { %v547_v26 = vpop.f32.mrb[2].mxu1 }
 0x315   :  { %v548_v40 = vadd.f32 %v578_v39, %v547_v26  ;;  %v649_v41 = vpop.f32.mrb[3].mxu1 }
 0x317   :  { %551 = vst [vmem:[#allocation13] sm:$0xf] %v548_v40 }
 0x318   :  { %831 = shalt.err (!%p828_p10)
}
 0x319   :  { %s832_s26 = scalar_lea.hbm %s1057_s10, 64 }
 0x31a   :  { %p833_p11 = scmp.ne.s32.totalorder %s1057_s10, %s832_s26  ;;  %p836_p12 = scmp.lt.u32.totalorder %s832_s26, %s1057_s10 }
 0x31c   :  { %p838_p13 = pnand %p836_p12, %p833_p11 }
 0x31e   :  { %841 = shalt.err (!%p838_p13)
}
 0x31f   :  { %561 = dma.vmem_to_hbm [thread:$0]  %s559_s27, 64, %s1057_s10, [#allocation4]  }
 0x320   :  { %850 = dma.done.wait [#allocation4], 64  }
 0x321   :  { %851 = vsyncadd [#allocation4], 4294967232 }
 0x322   :  { %565 = vsyncpa [#allocation3], 1 }
 0x323   :  { %566 = vsyncpa [#allocation6], 1 }
 0x324   :  { %567 = vsyncpa [#allocation9], 1 }
 0x325   :  { %568 = vsyncpa [#allocation12], 1 }
 0x326   :  { %569 = vsyncpa [#allocation4], 1 }

</bundles_post_ra>
